<compile_context>
chip_gen: v7x
topology: tpu7x:2x2x1
jax: 0.10.0
libtpu: 0.0.40
codegen_flags: <defaults>
</compile_context>

<pallas_src>
import functools

import jax
import jax.numpy as jnp
from jax.experimental import pallas as pl
from jax.experimental.pallas import tpu as pltpu

ALPHA = 0.1  # opt.alpha from Config


def _ceil_div(a, b):
    return -(-a // b)


def _vmem_budget():
    """(stream budget bytes, vmem_limit_bytes) chosen per chip generation."""
    try:
        kind = jax.devices()[0].device_kind.lower()
    except Exception:
        kind = ""
    if "v5" in kind or "v6" in kind:
        return 48 << 20, 96 << 20      # 128 MiB physical VMEM: big tiles
    return 20 << 20, 48 << 20          # v7x / unknown: only 64 MiB per TC


def _choose_row_tile(M, N, stream_elem_bytes, budget_bytes, min_grid=2):
    """Row tile tm (multiple of 8, preferably 32 for u8 packing) such that the
    double-buffered input streams plus in-kernel f32 temporaries fit the
    budget, with at least `min_grid` grid steps when M is large enough
    (so the parallel axis can shard across both v7x TensorCores)."""
    # 2 pipeline buffers per streamed plane + ~4 f32 temporaries per row.
    row_cost = N * (2 * stream_elem_bytes + 16)
    fit = max(8, int(budget_bytes // max(row_cost, 1)))
    if fit >= 32:
        fit = (fit // 32) * 32
    else:
        fit = (fit // 8) * 8
    m_up = _ceil_div(M, 8) * 8
    tm = min(fit, m_up)
    while min_grid > 1 and _ceil_div(M, tm) < min_grid and tm > 32:
        nxt = max(32, ((tm // 2) // 32) * 32)
        if nxt == tm:
            break
        tm = nxt
    return tm


def _weighted_sq_partials(wse, out_ref, *, rows_total, tm):
    """Mask rows past `rows_total` (partial last tile only) and store an
    (8, N) per-sublane partial sum: pure-VPU reduction, full-vreg store."""
    if rows_total % tm:  # static check: only emit the mask when needed
        row0 = pl.program_id(0) * tm
        rid = row0 + jax.lax.broadcasted_iota(jnp.int32, wse.shape, 0)
        wse = jnp.where(rid < rows_total, wse, jnp.float32(0.0))
    n = wse.shape[-1]
    out_ref[...] = wse.reshape(tm // 8, 8, n).sum(axis=0)[None]


def _myloss_counts_kernel(inp_ref, tgt_ref, cnt_ref, out_ref, *,
                          alpha, rows_total, tm):
    d = inp_ref[...].astype(jnp.float32) - tgt_ref[...].astype(jnp.float32)
    c1 = cnt_ref[0].astype(jnp.float32)    # one_index hit counts
    c0 = cnt_ref[1].astype(jnp.float32)    # zero_index hit counts
    w = jnp.float32(1.0 - alpha) * c1 + jnp.float32(alpha) * c0
    _weighted_sq_partials(d * d * w, out_ref, rows_total=rows_total, tm=tm)


def _myloss_partition_kernel(inp_ref, tgt_ref, out_ref, *,
                             alpha, rows_total, tm):
    # Fast path: one_index / zero_index exactly partition a binary target, so
    # the weight is (1-alpha) where target==1 and alpha where target==0.
    t = tgt_ref[...].astype(jnp.float32)
    d = inp_ref[...].astype(jnp.float32) - t
    w = jnp.where(t > 0, jnp.float32(1.0 - alpha), jnp.float32(alpha))
    _weighted_sq_partials(d * d * w, out_ref, rows_total=rows_total, tm=tm)


def myloss_pallas(one_index, zero_index, target, inp, *, alpha=ALPHA,
                  target_is_partition=False):
    """one_index / zero_index: int arrays of shape (2, K) -> (rows, cols)."""
    M, N = inp.shape
    budget, vmem_limit = _vmem_budget()

    if target_is_partition:
        stream_elem_bytes = inp.dtype.itemsize + target.dtype.itemsize
        tm = _choose_row_tile(M, N, stream_elem_bytes, budget)
        grid = _ceil_div(M, tm)
        kernel = functools.partial(_myloss_partition_kernel,
                                   alpha=float(alpha), rows_total=M, tm=tm)
        operands = (inp, target)
        in_specs = [pl.BlockSpec((tm, N), lambda i: (i, 0)),
                    pl.BlockSpec((tm, N), lambda i: (i, 0))]
    else:
        # One fused uint8 scatter-add building per-element hit counts for both
        # index sets (plane 0: one_index, plane 1: zero_index).  Reproduces
        # duplicate-index semantics exactly (uint8 wraps only past 255
        # duplicates of one element, which does not occur for MDA data).
        # TODO(synk): if the index sets are static across training steps, hoist
        # this scatter out of the step and reuse the cached count map.
        k1 = one_index.shape[1]
        k0 = zero_index.shape[1]
        sel = jnp.concatenate([jnp.zeros((k1,), jnp.int32),
                               jnp.ones((k0,), jnp.int32)])
        rows = jnp.concatenate([one_index[0], zero_index[0]]).astype(jnp.int32)
        cols = jnp.concatenate([one_index[1], zero_index[1]]).astype(jnp.int32)
        cnt = jnp.zeros((2, M, N), jnp.uint8).at[sel, rows, cols].add(
            jnp.ones((k1 + k0,), jnp.uint8))

        stream_elem_bytes = inp.dtype.itemsize + target.dtype.itemsize + 2
        tm = _choose_row_tile(M, N, stream_elem_bytes, budget)
        grid = _ceil_div(M, tm)
        kernel = functools.partial(_myloss_counts_kernel,
                                   alpha=float(alpha), rows_total=M, tm=tm)
        operands = (inp, target, cnt)
        in_specs = [pl.BlockSpec((tm, N), lambda i: (i, 0)),
                    pl.BlockSpec((tm, N), lambda i: (i, 0)),
                    pl.BlockSpec((2, tm, N), lambda i: (0, i, 0))]

    partials = pl.pallas_call(
        kernel,
        out_shape=jax.ShapeDtypeStruct((grid, 8, N), jnp.float32),
        grid_spec=pltpu.PrefetchScalarGridSpec(
            num_scalar_prefetch=0,
            grid=(grid,),
            in_specs=in_specs,
            out_specs=pl.BlockSpec((1, 8, N), lambda i: (i, 0, 0)),
        ),
        compiler_params=pltpu.CompilerParams(
            dimension_semantics=("parallel",),
            vmem_limit_bytes=vmem_limit,
        ),
    )(*operands)

    # Tiny cross-tile reduction of the (grid, 8, N) partials in plain JAX.
    return jnp.sum(partials)


def myloss_ref(one_index, zero_index, target, inp, *, alpha=ALPHA):
    loss_sum = (inp.astype(jnp.float32) - target.astype(jnp.float32)) ** 2
    return (1.0 - alpha) * loss_sum[one_index[0], one_index[1]].sum() + \
        alpha * loss_sum[zero_index[0], zero_index[1]].sum()


if __name__ == "__main__":
    key = jax.random.PRNGKey(0)
    k1, k2 = jax.random.split(key)

    M, N = 64, 128  # small MDA-association-matrix-like shape
    inp = jax.random.uniform(k1, (M, N), dtype=jnp.float32)
    # binary target matrix (typical MDA association matrix)
    target = (jax.random.uniform(k2, (M, N)) > 0.9).astype(jnp.float32)

    # index pairs: positions of ones and zeros in the binary target
    rows, cols = jnp.meshgrid(jnp.arange(M), jnp.arange(N), indexing="ij")
    flat_t = target.reshape(-1)
    order = jnp.argsort(-flat_t)               # ones first, zeros after
    n_one = int(jnp.sum(flat_t))
    flat_rows = rows.reshape(-1)[order]
    flat_cols = cols.reshape(-1)[order]
    one_index = jnp.stack([flat_rows[:n_one], flat_cols[:n_one]]).astype(jnp.int32)
    zero_index = jnp.stack([flat_rows[n_one:], flat_cols[n_one:]]).astype(jnp.int32)

    ref = myloss_ref(one_index, zero_index, target, inp)

    # General path: fused u8 count-map scatter + 3-stream kernel.
    out = jax.block_until_ready(
        myloss_pallas(one_index, zero_index, target, inp))
    assert jnp.allclose(out, ref, rtol=1e-5, atol=1e-5), (out, ref)

    # Fast path: indices exactly partition the binary target (typical MDA use).
    out_fast = jax.block_until_ready(
        myloss_pallas(one_index, zero_index, target, inp,
                      target_is_partition=True))
    assert jnp.allclose(out_fast, ref, rtol=1e-5, atol=1e-5), (out_fast, ref)

    print("KERNEL_OK")
</pallas_src>

<mosaic_0001>
module attributes {stable_mosaic.version = 11 : i64} {
  func.func @_myloss_counts_kernel(%arg0: i32, %arg1: memref<32x128xf32, #tpu.memory_space<vmem>>, %arg2: memref<32x128xf32, #tpu.memory_space<vmem>>, %arg3: memref<2x32x128xi8, #tpu.memory_space<vmem>>, %arg4: memref<1x8x128xf32, #tpu.memory_space<vmem>>) attributes {dimension_semantics = [#tpu.dimension_semantics<parallel>], iteration_bounds = array<i64: 2>, scalar_prefetch = 0 : i64, scratch_operands = 0 : i64, tpu.core_type = #tpu.core_type<tc>, window_params = [{transform_indices = @transform_0, window_bounds = array<i64: 32, 128>}, {transform_indices = @transform_1, window_bounds = array<i64: 32, 128>}, {transform_indices = @transform_2, window_bounds = array<i64: 2, 32, 128>}, {transform_indices = @transform_3, window_bounds = array<i64: 1, 8, 128>}]} {
    %c0 = arith.constant 0 : index
    %c0_0 = arith.constant 0 : index
    %0 = vector.load %arg1[%c0, %c0_0] : memref<32x128xf32, #tpu.memory_space<vmem>>, vector<32x128xf32>
    %c0_1 = arith.constant 0 : index
    %c0_2 = arith.constant 0 : index
    %1 = vector.load %arg2[%c0_1, %c0_2] : memref<32x128xf32, #tpu.memory_space<vmem>>, vector<32x128xf32>
    %2 = arith.subf %0, %1 : vector<32x128xf32>
    %c0_3 = arith.constant 0 : index
    %c0_4 = arith.constant 0 : index
    %c0_5 = arith.constant 0 : index
    %3 = vector.load %arg3[%c0_3, %c0_4, %c0_5] : memref<2x32x128xi8, #tpu.memory_space<vmem>>, vector<1x32x128xi8>
    %4 = vector.shape_cast %3 : vector<1x32x128xi8> to vector<32x128xi8>
    %5 = arith.uitofp %4 : vector<32x128xi8> to vector<32x128xf32>
    %c1 = arith.constant 1 : index
    %c0_6 = arith.constant 0 : index
    %c0_7 = arith.constant 0 : index
    %6 = vector.load %arg3[%c1, %c0_6, %c0_7] : memref<2x32x128xi8, #tpu.memory_space<vmem>>, vector<1x32x128xi8>
    %7 = vector.shape_cast %6 : vector<1x32x128xi8> to vector<32x128xi8>
    %8 = arith.uitofp %7 : vector<32x128xi8> to vector<32x128xf32>
    %cst = arith.constant 0.899999976 : f32
    %9 = vector.broadcast %cst : f32 to vector<32x128xf32>
    %10 = arith.mulf %9, %5 : vector<32x128xf32>
    %cst_8 = arith.constant 1.000000e-01 : f32
    %11 = vector.broadcast %cst_8 : f32 to vector<32x128xf32>
    %12 = arith.mulf %11, %8 : vector<32x128xf32>
    %13 = arith.addf %10, %12 : vector<32x128xf32>
    %14 = arith.mulf %2, %2 : vector<32x128xf32>
    %15 = arith.mulf %14, %13 : vector<32x128xf32>
    %16 = vector.shape_cast %15 : vector<32x128xf32> to vector<4x8x128xf32>
    %cst_9 = arith.constant dense<0.000000e+00> : vector<8x128xf32>
    %17 = vector.multi_reduction <add>, %16, %cst_9 [0] : vector<4x8x128xf32> to vector<8x128xf32>
    %18 = vector.shape_cast %17 : vector<8x128xf32> to vector<1x8x128xf32>
    %c0_10 = arith.constant 0 : index
    %c0_11 = arith.constant 0 : index
    %c0_12 = arith.constant 0 : index
    %19 = vector.load %arg4[%c0_10, %c0_11, %c0_12] : memref<1x8x128xf32, #tpu.memory_space<vmem>>, vector<1x8x128xf32>
    tpu.vector_store %arg4[%c0_10, %c0_11, %c0_12], %18 {strides = array<i32>} : memref<1x8x128xf32, #tpu.memory_space<vmem>>, vector<1x8x128xf32>,
    return
  }
  func.func @transform_0(%arg0: i32) -> (i32, i32) {
    %c0_i32 = arith.constant 0 : i32
    %c0_i32_0 = arith.constant 0 : i32
    return %arg0, %c0_i32 : i32, i32
  }
  func.func @transform_1(%arg0: i32) -> (i32, i32) {
    %c0_i32 = arith.constant 0 : i32
    %c0_i32_0 = arith.constant 0 : i32
    return %arg0, %c0_i32 : i32, i32
  }
  func.func @transform_2(%arg0: i32) -> (i32, i32, i32) {
    %c0_i32 = arith.constant 0 : i32
    %c0_i32_0 = arith.constant 0 : i32
    %c0_i32_1 = arith.constant 0 : i32
    return %c0_i32, %arg0, %c0_i32_0 : i32, i32, i32
  }
  func.func @transform_3(%arg0: i32) -> (i32, i32, i32) {
    %c0_i32 = arith.constant 0 : i32
    %c0_i32_0 = arith.constant 0 : i32
    %c0_i32_1 = arith.constant 0 : i32
    return %arg0, %c0_i32, %c0_i32_0 : i32, i32, i32
  }
}

</mosaic_0001>

<bundles_post_ra>
// kernel: tpu_custom_call.1
= control target key start
LH: loop header
LB: loop body
LE: loop exit
PB: predicated region body
PF: predicated region fallthrough
CT: control target
= control target key end

     0   :  { %s983_s0 = inlined_call_operand.hbm [shape: f32[64,128], index: 0, kind: input, shape index: {}]   ;;  %s984_s1 = inlined_call_operand.hbm [shape: f32[64,128], index: 1, kind: input, shape index: {}]   ;;  %s985_s2 = inlined_call_operand.hbm [shape: u8[2,64,128], index: 2, kind: input, shape index: {}]   ;;  %s986_s3 = inlined_call_operand.hbm [shape: f32[2,8,128], index: 3, kind: output, shape index: {}]  }
   0x1   :  { %993 = sst [smem:[#allocation12_spill]] %s984_s1 }
   0x2   :  { %8 = vsyncpa [#allocation3], 0 }
   0x3   :  { %10 = vsyncpa [#allocation3 + $0x1], 0 }
   0x4   :  { %11 = vsyncpa [#allocation6], 0 }
   0x5   :  { %13 = vsyncpa [#allocation6 + $0x1], 0 }
   0x6   :  { %14 = vsyncpa [#allocation4], 0 }
   0x7   :  { %16 = vsyncpa [#allocation4 + $0x1], 0  ;;  %s728_s12 = smov 0   ;;  %s730_s13 = smov 0  }
   0x8   :  { %s732_s14 = smov 0   ;;  %s734_s15 = smov 0  }
   0x9 LB: > { %s749_s16 = sadd.s32 4294967295, %s699_s15   ;;  %s457_s17 = sadd.s32 4294967294, %s699_s15   ;;  %s699_s15 = sphi %s734_s15, %s1011_s15   ;;  %s695_s14 = sphi %s732_s14, %s1010_s14   ;;  %s691_s13 = sphi %s730_s13, %s1009_s13   ;;  %s687_s12 = sphi %s728_s12, %s1008_s12  }
   0xa   : > { %s753_s18 = sadd.s32 1, %s699_s15   ;;  %s29_s19 = sadd.s32 1, %s695_s14 }
   0xb   : > { %s26_s20 = ssub.s32 %s699_s15, %s753_s18  ;;  %p36_p0 = scmp.ne.s32.totalorder %s695_s14, %s691_s13 }
   0xc   : > { %p27_p1 = scmp.eq.s32.totalorder %s26_s20, 0  ;;  %p37_p2 = scmp.eq.s32.totalorder %s699_s15, 0 }
   0xd   : > { %p42_p3 = scmp.ne.s32.totalorder %s691_s13, %s687_s12  ;;  %p43_p4 = scmp.eq.s32.totalorder %s749_s16, 0 }
   0xe   : > { %s765_s21 = scalar_select %p27_p1, %s695_s14, %s29_s19  }
   0xf   : > { %p38_p5 = por %p37_p2, %p36_p0  ;;  %p767_p6 = por %p43_p4, %p42_p3 }
  0x10   : > { %p118_p7 = scmp.eq.s32.totalorder %s749_s16, 1  ;;  %p124_p8 = scmp.eq.s32.totalorder %s457_s17, 1 }
  0x11   : > { %s994_s22 = scalar_select %p767_p6, 1, 0 }
  0x12   : > { %p502_p10 = scmp.lt.s32.totalorder %s699_s15, 2  ;;  %p774_p11 = por %p118_p7, %p36_p0 }
  0x13   : > { %p778_p12 = por %p124_p8, %p42_p3  ;;  %s783_s25 = sand.u32 1, %s695_s14  }
  0x14   : > { %s995_s23 = scalar_select %p774_p11, 1, 0 }
  0x15   : > { %s996_s24 = scalar_select %p778_p12, 1, 0 }
  0x16   : > { %s478_s26 = sshll.u32 %s699_s15, 9  ;;  %s460_s27 = sshll.u32 %s783_s25, 5 }
  0x17   : > { %p787_p13 = pnand %p502_p10, %p38_p5  ;;  %s165_s29 = sand.u32 1, %s699_s15  }
  0x18   : > { %s998_s1 = sld [smem:[#allocation12_spill]]  ;;  %s169_s6 = scalar_lea.vmem [#allocation5], %s460_s27 }
  0x19   : > { %s176_s7 = sshll.u32 %s169_s6, 4  ;;  %s466_s8 = sshll.u32 %s783_s25, 4  ;;  %s801_s7 = int_to_ptr.vmem [resolvable:$true] %s176_s7 }
  0x1a   : > { %s804_s9 = scalar_lea.sflag [#allocation6], %s165_s29  ;;  %p810_p1 = pneg %p787_p13 }
  0x1e   : > { %s797_s5 = scalar_lea.hbm %s998_s1, %s478_s26  ;;  %s544_s20 = scalar_lea.hbm %s998_s1, 1024 }
  0x1f   : > { %s539_s10 = scalar_lea.hbm %s797_s5, 512  ;;  %p545_p4 = scmp.lt.u32.totalorder %s797_s5, %s998_s1 }
  0x20   : > { %p540_p0 = scmp.ne.s32.totalorder %s797_s5, %s539_s10  ;;  %p546_p5 = scmp.lt.u32.totalorder %s544_s20, %s539_s10 }
  0x21   : > { %p548_p8 = scmp.lt.u32.totalorder %s539_s10, %s797_s5 }
  0x22   : > { %p542_p2 = pnand %p810_p1, %p540_p0  ;;  %p547_p7 = por %p546_p5, %p545_p4 }
  0x24   : > { %p543_p3 = pneg %p542_p2  ;;  %p549_p10 = por %p548_p8, %p547_p7 }
  0x26   : > { %p550_p9 = pnand %p549_p10, %p543_p3 }
  0x28   : > { %553 = shalt.err (!%p550_p9)
}
  0x29   : > { %s554_s29 = scalar_lea.vmem %s801_s7, 512  ;;  %s701_s6 = smov [#allocation5]  }
  0x2a   : > { %p555_p0 = scmp.ne.s32.totalorder %s801_s7, %s554_s29  ;;  %s559_s17 = sshll.u32 %s701_s6, 4  ;;  %s560_s17 = int_to_ptr.vmem [resolvable:$false] %s559_s17 }
  0x2b   : > { %s561_s19 = scalar_lea.vmem %s560_s17, 1024  ;;  %p562_p11 = scmp.lt.s32.totalorder %s801_s7, %s560_s17 }
  0x2c   : > { %p557_p2 = pnand %p555_p0, %p810_p1  ;;  %p563_p6 = scmp.lt.s32.totalorder %s561_s19, %s554_s29 }
  0x2e   : > { %p558_p12 = pneg %p557_p2  ;;  %p564_p4 = por %p563_p6, %p562_p11 }
  0x30   : > { %p565_p5 = pnand %p564_p4, %p558_p12 }
  0x32   : > { %568 = shalt.err (!%p565_p5)
}
  0x33   : > { %s989_s10 = smov 128   ;;  %s991_s20 = smov 8  }
  0x34   : > { %494 = dma.hbm_to_vmem [thread:$0]  (!%p787_p13), %s797_s5, 512, %s801_s7, %s804_s9, %s989_s10, %s989_s10, %s991_s20  }
  0x35   : > { %p468_p6 = scmp.ge.s32.totalorder %s699_s15, 1  ;;  %s190_s30 = scalar_lea.vmem [#allocation7], %s466_s8 }
  0x36   : > { %s196_s4 = sshll.u32 %s190_s30, 4  ;;  %p204_p9 = scmp.lt.s32.totalorder %s699_s15, 3  ;;  %s841_s4 = int_to_ptr.vmem [resolvable:$true] %s196_s4 }
  0x37   : > { %s852_s19 = scalar_lea.hbm %s983_s0, %s478_s26  ;;  %s148_s5 = scalar_lea.vmem [#allocation2], %s460_s27 }
  0x38   : > { %p843_p11 = pnand %p468_p6, %p204_p9  ;;  %s155_s7 = sshll.u32 %s148_s5, 4  ;;  %s856_s7 = int_to_ptr.vmem [resolvable:$true] %s155_s7 }
  0x39   : > { %s467_s8 = sshll.u32 %s699_s15, 7  ;;  %s145_s30 = scalar_lea.sflag [#allocation3], %s783_s25 }
  0x3a   : > { %s1000_s29 = scalar_select %p843_p11, 1, 0 }
  0x3b   : > { %s569_s10 = scalar_lea.hbm %s852_s19, 512  ;;  %s574_s26 = scalar_lea.hbm %s983_s0, 1024 }
  0x3c   : > { %p570_p12 = scmp.ne.s32.totalorder %s852_s19, %s569_s10  ;;  %p575_p8 = scmp.lt.u32.totalorder %s852_s19, %s983_s0 }
  0x3d   : > { %p576_p10 = scmp.lt.u32.totalorder %s574_s26, %s569_s10  ;;  %p578_p2 = scmp.lt.u32.totalorder %s569_s10, %s852_s19 }
  0x3e   : > { %p572_p3 = pnand %p570_p12, %p810_p1 }
  0x3f   : > { %p577_p0 = por %p576_p10, %p575_p8 }
  0x40   : > { %p573_p7 = pneg %p572_p3 }
  0x41   : > { %p579_p4 = por %p578_p2, %p577_p0 }
  0x43   : > { %p580_p5 = pnand %p579_p4, %p573_p7 }
  0x45   : > { %583 = shalt.err (!%p580_p5)
}
  0x46   : > { %s584_s27 = scalar_lea.vmem %s856_s7, 512  ;;  %s704_s20 = smov [#allocation2]  }
  0x47   : > { %p585_p6 = scmp.ne.s32.totalorder %s856_s7, %s584_s27  ;;  %s589_s5 = sshll.u32 %s704_s20, 4  ;;  %s590_s5 = int_to_ptr.vmem [resolvable:$false] %s589_s5 }
  0x48   : > { %s591_s1 = scalar_lea.vmem %s590_s5, 1024  ;;  %p592_p3 = scmp.lt.s32.totalorder %s856_s7, %s590_s5 }
  0x49   : > { %p587_p9 = pnand %p585_p6, %p810_p1  ;;  %p593_p11 = scmp.lt.s32.totalorder %s591_s1, %s584_s27 }
  0x4b   : > { %p588_p12 = pneg %p587_p9  ;;  %p594_p8 = por %p593_p11, %p592_p3 }
  0x4d   : > { %p595_p10 = pnand %p594_p8, %p588_p12 }
  0x4f   : > { %598 = shalt.err (!%p595_p10)
}
  0x50   : > { %s1001_s10 = smov 8   ;;  %s1002_s6 = smov 128  }
  0x51   : > { %491 = dma.hbm_to_vmem [thread:$0]  (!%p787_p13), %s852_s19, 512, %s856_s7, %s145_s30, %s1002_s6, %s1002_s6, %s1001_s10  }
  0x52   : > { %s891_s27 = scalar_lea.hbm %s985_s2, %s467_s8  ;;  %s604_s1 = scalar_lea.hbm %s985_s2, 512 }
  0x53   : > { %s599_s20 = scalar_lea.hbm %s891_s27, 256  ;;  %p605_p2 = scmp.lt.u32.totalorder %s891_s27, %s985_s2 }
  0x54   : > { %p600_p11 = scmp.ne.s32.totalorder %s891_s27, %s599_s20  ;;  %p606_p4 = scmp.lt.u32.totalorder %s604_s1, %s599_s20 }
  0x55   : > { %p608_p6 = scmp.lt.u32.totalorder %s599_s20, %s891_s27 }
  0x56   : > { %p602_p7 = pnand %p600_p11, %p810_p1  ;;  %p607_p5 = por %p606_p4, %p605_p2 }
  0x58   : > { %p603_p0 = pneg %p602_p7  ;;  %p609_p9 = por %p608_p6, %p607_p5 }
  0x5a   : > { %p610_p12 = pnand %p609_p9, %p603_p0 }
  0x5c   : > { %613 = shalt.err (!%p610_p12)
}
  0x5d   : > { %s614_s8 = scalar_lea.vmem %s841_s4, 256  ;;  %s705_s30 = smov [#allocation7]  }
  0x5e   : > { %p615_p3 = scmp.ne.s32.totalorder %s841_s4, %s614_s8  ;;  %s619_s26 = sshll.u32 %s705_s30, 4  ;;  %s620_s26 = int_to_ptr.vmem [resolvable:$false] %s619_s26 }
  0x5f   : > { %s621_s17 = scalar_lea.vmem %s620_s26, 512  ;;  %p622_p11 = scmp.lt.s32.totalorder %s841_s4, %s620_s26 }
  0x60   : > { %p617_p8 = pnand %p615_p3, %p810_p1  ;;  %p623_p7 = scmp.lt.s32.totalorder %s621_s17, %s614_s8 }
  0x62   : > { %p618_p10 = pneg %p617_p8  ;;  %p624_p2 = por %p623_p7, %p622_p11 }
  0x64   : > { %p625_p4 = pnand %p624_p2, %p618_p10 }
  0x66   : > { %628 = shalt.err (!%p625_p4)
}
  0x67   : > { %s706_s20 = smov 256   ;;  %p1003_p1 = scmp.ne.s32.totalorder %s1000_s29, 0 }
  0x68   : > { %497 = dma.hbm_to_vmem [thread:$0]  (!%p787_p13), %s891_s27, 256, %s841_s4, %s804_s9, %s706_s20, %s1002_s6, %s1001_s10  }
  0x69   : > { %208 = sbr.rel (%p1003_p1) target bundleno = 153 (0x99), region = 32  ;;  %s920_s11 = sand.u32 (!%p1003_p1), 1, %s691_s13  }
  0x6a   : > { %s469_s25 = sshll.u32 (!%p1003_p1), %s920_s11, 5  ;;  %s211_s5 = scalar_lea.sflag (!%p1003_p1), [#allocation3], %s920_s11 }
  0x6b   : > { %s214_s1 = scalar_lea.vmem (!%p1003_p1), [#allocation2], %s469_s25  ;;  %p1004_p0 = scmp.ne.s32.totalorder (!%p1003_p1), %s994_s22, 0 }
  0x70   : > { %674 = dma.done.wait (%p1004_p0), %s211_s5, 512  }
  0x71   : > { %676 = vsyncadd (%p1004_p0), %s211_s5, 4294966784  ;;  %s219_s28 = sand.u32 1, %s749_s16   ;;  %s223_s4 = scalar_lea.vmem [#allocation5], %s469_s25 }
  0x72   : > { %s220_s9 = scalar_lea.sflag [#allocation6], %s219_s28 }
  0x73   : > { %678 = dma.done.wait (%p1004_p0), %s220_s9, 768  }
  0x74   : > { %680 = vsyncadd (%p1004_p0), %s220_s9, 4294966528  ;;  %s471_s29 = sshll.u32 %s920_s11, 4  ;;  %v267_v0 = vld [vmem:[%s214_s1] sm:$0xff]  ;;  %v268_v1 = vld [vmem:[%s214_s1 + $0x8] sm:$0xff]  ;;  %s472_s22 = sshll.u32 %s920_s11, 3 }
  0x75   : > { %v269_v2 = vld [vmem:[%s214_s1 + $0x10] sm:$0xff]  ;;  %v270_v3 = vld [vmem:[%s214_s1 + $0x18] sm:$0xff]  ;;  %v271_v4 = vld [vmem:[%s223_s4] sm:$0xff]  ;;  %s232_s10 = scalar_lea.vmem [#allocation7], %s471_s29  ;;  %s264_s6 = scalar_lea.vmem [#allocation8], %s472_s22 }
  0x76   : > { %v272_v5 = vld [vmem:[%s223_s4 + $0x8] sm:$0xff]  ;;  %v273_v6 = vld [vmem:[%s223_s4 + $0x10] sm:$0xff]  ;;  %v274_v7 = vld [vmem:[%s223_s4 + $0x18] sm:$0xff]  ;;  %v275_v8 = vsub.f32 %v267_v0, %v271_v4  ;;  %s344_s27 = sshll.u32 %s264_s6, 4  ;;  %s475_s19 = sshll.u32 %s749_s16, 7  ;;  %s936_s27 = int_to_ptr.vmem [resolvable:$true] %s344_s27 }
  0x77   : > { %v276_v9 = vsub.f32 %v268_v1, %v272_v5  ;;  %v279_v10 = vld [vmem:[%s232_s10] sm:$0xff]  ;;  %v277_v11 = vsub.f32 %v269_v2, %v273_v6  ;;  %v278_v12 = vsub.f32 %v270_v3, %v274_v7  ;;  %v473_v15 = vld [vmem:[%s232_s10 + $0x8] sm:$0xff]  ;;  %s941_s30 = scalar_lea.hbm %s986_s3, %s475_s19  ;;  %s331_s26 = scalar_lea.sflag [#allocation4], %s920_s11 }
  0x78   : > { %v280_v13 = vunpack.c.0.s8 %v279_v10  ;;  %v281_v14 = vunpack.c.1.s8 %v279_v10  ;;  %v282_v16 = vunpack.c.2.s8 %v279_v10  ;;  %v283_v17 = vunpack.c.3.s8 %v279_v10  ;;  %s629_s17 = scalar_lea.vmem %s936_s27, 128  ;;  %p1005_p5 = scmp.ne.s32.totalorder %s995_s23, 0 }
  0x79   : > { %v294_v18 = vunpack.c.0.s8 %v473_v15  ;;  %v295_v19 = vunpack.c.1.s8 %v473_v15  ;;  %v296_v22 = vunpack.c.2.s8 %v473_v15  ;;  %v297_v23 = vunpack.c.3.s8 %v473_v15  ;;  %p630_p13 = scmp.ne.s32.totalorder %s936_s27, %s629_s17  ;;  %s707_s16 = smov [#allocation8]  }
  0x7a   : > { %v284_v20 = vand.u32 255, %v280_v13  ;;  %v285_v21 = vand.u32 255, %v281_v14  ;;  %v286_v24 = vand.u32 255, %v282_v16  ;;  %v287_v25 = vand.u32 255, %v283_v17  ;;  %s633_s20 = sshll.u32 %s707_s16, 4  ;;  %s634_s20 = int_to_ptr.vmem [resolvable:$false] %s633_s20 }
  0x7b   : > { %v298_v26 = vand.u32 255, %v294_v18  ;;  %v299_v27 = vand.u32 255, %v295_v19  ;;  %v300_v30 = vand.u32 255, %v296_v22  ;;  %v301_v31 = vand.u32 255, %v297_v23  ;;  %p631_p6 = pnand %p630_p13, %p1005_p5  ;;  %s635_s25 = scalar_lea.vmem %s634_s20, 256 }
  0x7c   : > { %v288_v28 = vcvt.s32.f32 %v284_v20  ;;  %v289_v29 = vcvt.s32.f32 %v285_v21  ;;  %v290_v32 = vcvt.s32.f32 %v286_v24  ;;  %v291_v33 = vcvt.s32.f32 %v287_v25  ;;  %p636_p12 = scmp.lt.s32.totalorder %s936_s27, %s634_s20  ;;  %p637_p3 = scmp.lt.s32.totalorder %s635_s25, %s629_s17 }
  0x7d   : > { %v302_v34 = vcvt.s32.f32 %v298_v26  ;;  %v303_v35 = vcvt.s32.f32 %v299_v27  ;;  %v304_v36 = vcvt.s32.f32 %v300_v30  ;;  %v305_v37 = vcvt.s32.f32 %v301_v31  ;;  %p632_p9 = pneg %p631_p6 }
  0x7e   : > { %v306_v38 = vmul.f32 0.9, %v288_v28  ;;  %v307_v39 = vmul.f32 0.9, %v289_v29  ;;  %v308_v40 = vmul.f32 0.9, %v290_v32  ;;  %v318_v43 = vmul.f32 %v275_v8, %v275_v8  ;;  %p638_p8 = por %p637_p3, %p636_p12 }
  0x7f   : > { %v309_v41 = vmul.f32 0.9, %v291_v33  ;;  %v310_v42 = vmul.f32 0.1, %v302_v34  ;;  %v311_v44 = vmul.f32 0.1, %v303_v35  ;;  %v319_v47 = vmul.f32 %v276_v9, %v276_v9 }
  0x80   : > { %v312_v45 = vmul.f32 0.1, %v304_v36  ;;  %v313_v46 = vmul.f32 0.1, %v305_v37  ;;  %v320_v49 = vmul.f32 %v277_v11, %v277_v11  ;;  %v321_v53 = vmul.f32 %v278_v12, %v278_v12  ;;  %p639_p10 = pnand %p638_p8, %p632_p9 }
  0x81   : > { %v314_v48 = vadd.f32 %v310_v42, %v306_v38  ;;  %v315_v50 = vadd.f32 %v311_v44, %v307_v39 }
  0x82   : > { %v316_v51 = vadd.f32 %v312_v45, %v308_v40  ;;  %v317_v52 = vadd.f32 %v313_v46, %v309_v41 }
  0x83   : > { %v322_v54 = vmul.f32 %v318_v43, %v314_v48  ;;  %v323_v55 = vmul.f32 %v319_v47, %v315_v50 }
  0x84   : > { %v324_v56 = vmul.f32 %v320_v49, %v316_v51  ;;  %v325_v57 = vmul.f32 %v321_v53, %v317_v52 }
  0x85   : > { %v326_v58 = vadd.f32 %v323_v55, %v322_v54 }
  0x87   : > { %v327_v59 = vadd.f32 %v326_v58, %v324_v56 }
  0x89   : > { %v328_v60 = vadd.f32 %v327_v59, %v325_v57 }
  0x8b   : > { %329 = vst [vmem:[%s264_s6] sm:$0xff] %v328_v60 }
  0x8c   : > { %642 = shalt.err (!%p639_p10)
}
  0x8d   : > { %s643_s11 = scalar_lea.hbm %s941_s30, 128  ;;  %s647_s28 = scalar_lea.hbm %s986_s3, 256 }
  0x8e   : > { %p644_p11 = scmp.ne.s32.totalorder %s941_s30, %s643_s11  ;;  %p648_p4 = scmp.lt.u32.totalorder %s941_s30, %s986_s3 }
  0x8f   : > { %p649_p1 = scmp.lt.u32.totalorder %s647_s28, %s643_s11  ;;  %p651_p13 = scmp.lt.u32.totalorder %s643_s11, %s941_s30 }
  0x90   : > { %p645_p7 = pnand %p644_p11, %p1005_p5 }
  0x91   : > { %p650_p0 = por %p649_p1, %p648_p4 }
  0x92   : > { %p646_p2 = pneg %p645_p7 }
  0x93   : > { %p652_p6 = por %p651_p13, %p650_p0 }
  0x95   : > { %p653_p9 = pnand %p652_p6, %p646_p2 }
  0x97   : > { %656 = shalt.err (!%p653_p9)
}
  0x98   : > { %486 = dma.vmem_to_hbm [thread:$0]  (%p1005_p5), %s936_s27, 128, %s941_s30, %s331_s26  }
  0x99 PF: > { %s356_s29 = sand.u32 1, %s687_s12   ;;  %p1006_p12 = scmp.ne.s32.totalorder %s996_s24, 0 }
  0x9a   : > { %p1007_p3 = scmp.ge.s32.totalorder %s699_s15, 2  ;;  %s357_s10 = scalar_lea.sflag [#allocation4], %s356_s29 }
  0x9c   : > { %p499_p8 = pnand %p1007_p3, %p1006_p12 }
  0x9e   : > { %682 = dma.done.wait (!%p499_p8), %s357_s10, 128  }
  0x9f   : > { %684 = vsyncadd (!%p499_p8), %s357_s10, 4294967168  ;;  %p19_p10 = scmp.ge.s32.totalorder %s753_s18, 4   ;;  %s1008_s12 = smov %s691_s13 }
  0xa0   : > { %s1009_s13 = smov %s695_s14  ;;  %s1010_s14 = smov %s765_s21 }
  0xa1   : > { %s1011_s15 = smov %s753_s18  ;;  %21 = sbr.rel (!%p19_p10) target bundleno = 9 (0x9), region = 102 }
  0xa8   :  { %362 = vsyncpa [#allocation3], 1 }
  0xa9   :  { %364 = vsyncpa [#allocation3 + $0x1], 1 }
  0xaa   :  { %365 = vsyncpa [#allocation6], 1 }
  0xab   :  { %367 = vsyncpa [#allocation6 + $0x1], 1 }
  0xac   :  { %368 = vsyncpa [#allocation4], 1 }
  0xad   :  { %370 = vsyncpa [#allocation4 + $0x1], 1 }

</bundles_post_ra>
